<compile_context>
chip_gen: v7x
topology: tpu7x:2x2x1
jax: 0.10.0
libtpu: 0.0.40
codegen_flags: <defaults>
</compile_context>

<pallas_src>
import functools

import jax
import jax.numpy as jnp
from jax.experimental import pallas as pl
from jax.experimental.pallas import tpu as pltpu

N_BINS = 10  # matches CalibrationError(n_bins=10)


def _ece_partial_kernel(logits_ref, labels_ref, out_ref, *, n_valid, tile_n, n_bins):
    """One N-tile: emit signed per-bin sums of (confidence - accuracy).

    logits_ref: (C, tile_n)  native dtype (classes on sublanes, samples on lanes)
    labels_ref: (1, tile_n)  int32
    out_ref:    (n_bins, 1)  f32 partial sums for this tile
    """
    i = pl.program_id(0)
    logits = logits_ref[...].astype(jnp.float32)                  # (C, tile_n)
    labels = labels_ref[...]                                       # (1, tile_n)
    C = logits.shape[0]

    # max softmax over classes:  max_c softmax = 1 / sum_c exp(logit_c - max_c)
    col_max = jnp.max(logits, axis=0, keepdims=True)               # (1, tile_n)
    denom = jnp.sum(jnp.exp(logits - col_max), axis=0, keepdims=True)
    conf = pl.reciprocal(denom, approx=False)                      # (1, tile_n)

    # argmax over classes (first max index, like torch.max)
    row_idx = jax.lax.broadcasted_iota(jnp.int32, logits.shape, 0)
    preds = jnp.min(jnp.where(logits == col_max, row_idx, C), axis=0, keepdims=True)
    acc = (preds == labels).astype(jnp.float32)                    # (1, tile_n)

    # mask lanes past the true batch size (ragged last tile)
    lane = jax.lax.broadcasted_iota(jnp.int32, conf.shape, 1)
    valid = (i * tile_n + lane) < n_valid
    conf = jnp.where(valid, conf, 1.0)                             # keep bin id defined
    diff = jnp.where(valid, conf - acc, 0.0)                       # masked (conf - acc)

    # bin id for the (k/n_bins, (k+1)/n_bins] intervals
    bin_id = jnp.clip(
        jnp.ceil(conf * jnp.float32(n_bins)).astype(jnp.int32) - 1, 0, n_bins - 1
    )                                                              # (1, tile_n)

    # one-hot accumulate every bin in a single pass: select + lane reduce (XLU)
    bins = jax.lax.broadcasted_iota(jnp.int32, (n_bins, tile_n), 0)
    contrib = jnp.where(bins == bin_id, diff, 0.0)                 # (n_bins, tile_n)
    out_ref[...] = jnp.sum(contrib, axis=1, keepdims=True)         # (n_bins, 1)


def _pick_tile_n(N, C, itemsize, n_bins):
    # Per tile VMEM footprint (approx):
    #   DMA input buffers (double-buffered): 2 * C * tile_n * itemsize
    #   in-kernel f32 working set:           ~ (C + n_bins + ~4) * tile_n * 4
    # Keep the whole thing within a few MiB so it fits the default scoped VMEM
    # on every chip (v5e 16 MiB, v6e/v7x 32 MiB) with plenty of headroom.
    budget_bytes = 6 * 1024 * 1024
    per_sample = 2 * C * itemsize + (C + n_bins + 4) * 4
    tile_n = budget_bytes // max(per_sample, 1)
    tile_n = min(tile_n, 2048)                  # beyond this: no measurable gain
    tile_n = min(tile_n, N + 127)               # don't over-allocate for small N
    tile_n = max(128, (tile_n // 128) * 128)    # lane-aligned
    return tile_n


def calibration_error(logits, labels, *, tile_n=None, n_bins=N_BINS):
    """logits: (N, C) float, labels: (N,) int -> (1,) float32 ECE."""
    N, C = logits.shape

    # classes -> sublanes, samples -> lanes; keep native dtype (no wrapper up-cast)
    logits_t = logits.T                                            # (C, N)
    labels2d = labels.astype(jnp.int32).reshape(1, N)

    if tile_n is None:
        tile_n = _pick_tile_n(N, C, jnp.dtype(logits.dtype).itemsize, n_bins)
    else:
        tile_n = max(128, (min(tile_n, N + 127) // 128) * 128)
    num_tiles = pl.cdiv(N, tile_n)

    kernel = functools.partial(
        _ece_partial_kernel, n_valid=N, tile_n=tile_n, n_bins=n_bins
    )
    partials = pl.pallas_call(
        kernel,
        grid=(num_tiles,),
        out_shape=jax.ShapeDtypeStruct((num_tiles, n_bins, 1), jnp.float32),
        in_specs=[
            pl.BlockSpec((C, tile_n), lambda i: (0, i)),           # logits (C, N)
            pl.BlockSpec((1, tile_n), lambda i: (0, i)),           # labels (1, N)
        ],
        out_specs=pl.BlockSpec((None, n_bins, 1), lambda i: (i, 0, 0)),
        compiler_params=pltpu.CompilerParams(
            dimension_semantics=("parallel",),                     # 2x on v7x (2 TCs)
        ),
    )(logits_t, labels2d)

    # abs only on the GLOBAL per-bin sums, then weight by 1/N (prop/count cancel)
    per_bin = jnp.sum(partials, axis=(0, 2))                       # (n_bins,)
    ece = jnp.sum(jnp.abs(per_bin)) / jnp.float32(N)
    return ece.reshape(1)


def _reference_ece(logits, labels):
    # plain-JAX reference mirroring the PyTorch module
    softmaxes = jax.nn.softmax(logits.astype(jnp.float32), axis=1)
    confidences = jnp.max(softmaxes, axis=1)
    predictions = jnp.argmax(softmaxes, axis=1)
    accuracies = (predictions == labels).astype(jnp.float32)
    n = logits.shape[0]
    ece = 0.0
    for k in range(N_BINS):
        lo, hi = k / N_BINS, (k + 1) / N_BINS
        in_bin = ((confidences > lo) & (confidences <= hi)).astype(jnp.float32)
        count = jnp.sum(in_bin)
        prop = count / n
        safe = jnp.maximum(count, 1.0)
        acc = jnp.sum(in_bin * accuracies) / safe
        conf = jnp.sum(in_bin * confidences) / safe
        ece = ece + jnp.where(count > 0, jnp.abs(conf - acc) * prop, 0.0)
    return jnp.array([ece], jnp.float32)


if __name__ == "__main__":
    key = jax.random.PRNGKey(0)
    k1, k2 = jax.random.split(key)
    N, C = 256, 16  # N samples, C classes
    logits = jax.random.normal(k1, (N, C), dtype=jnp.float32) * 2.0
    labels = jax.random.randint(k2, (N,), 0, C, dtype=jnp.int32)

    ref = _reference_ece(logits, labels)

    # multi-tile path (2 grid steps) + default single-tile path
    ece_tiled = jax.block_until_ready(calibration_error(logits, labels, tile_n=128))
    ece_default = jax.block_until_ready(calibration_error(logits, labels))
    assert jnp.allclose(ece_tiled, ref, atol=1e-5), (ece_tiled, ref)
    assert jnp.allclose(ece_default, ref, atol=1e-5), (ece_default, ref)

    # ragged tail: N not a multiple of the tile (exercises the in-kernel mask)
    N2 = 200
    logits2 = logits[:N2]
    labels2 = labels[:N2]
    ref2 = _reference_ece(logits2, labels2)
    ece_ragged = jax.block_until_ready(calibration_error(logits2, labels2, tile_n=128))
    assert jnp.allclose(ece_ragged, ref2, atol=1e-5), (ece_ragged, ref2)

    print("KERNEL_OK")
</pallas_src>

<mosaic_0001>
module attributes {stable_mosaic.version = 11 : i64} {
  func.func @_ece_partial_kernel(%arg0: i32, %arg1: memref<16x128xf32, #tpu.memory_space<vmem>>, %arg2: memref<1x128xi32, #tpu.memory_space<vmem>>, %arg3: memref<1x10x1xf32, #tpu.memory_space<vmem>>) attributes {dimension_semantics = [#tpu.dimension_semantics<parallel>], iteration_bounds = array<i64: 2>, scalar_prefetch = 0 : i64, scratch_operands = 0 : i64, tpu.core_type = #tpu.core_type<tc>, window_params = [{transform_indices = @transform_0, window_bounds = array<i64: 16, 128>}, {transform_indices = @transform_1, window_bounds = array<i64: 1, 128>}, {transform_indices = @transform_2, window_bounds = array<i64: 1, 10, 1>}]} {
    %c0 = arith.constant 0 : index
    %c0_0 = arith.constant 0 : index
    %0 = vector.load %arg1[%c0, %c0_0] : memref<16x128xf32, #tpu.memory_space<vmem>>, vector<16x128xf32>
    %c0_1 = arith.constant 0 : index
    %c0_2 = arith.constant 0 : index
    %1 = vector.load %arg2[%c0_1, %c0_2] : memref<1x128xi32, #tpu.memory_space<vmem>>, vector<1x128xi32>
    %cst = arith.constant dense<0xFF800000> : vector<128xf32>
    %2 = vector.multi_reduction <maximumf>, %0, %cst [0] : vector<16x128xf32> to vector<128xf32>
    %3 = vector.shape_cast %2 : vector<128xf32> to vector<1x128xf32>
    %4 = vector.broadcast %3 : vector<1x128xf32> to vector<16x128xf32>
    %5 = arith.subf %0, %4 : vector<16x128xf32>
    %6 = math.exp %5 : vector<16x128xf32>
    %cst_3 = arith.constant dense<0.000000e+00> : vector<128xf32>
    %7 = vector.multi_reduction <add>, %6, %cst_3 [0] : vector<16x128xf32> to vector<128xf32>
    %8 = vector.shape_cast %7 : vector<128xf32> to vector<1x128xf32>
    %9 = tpu.reciprocal %8 : vector<1x128xf32> -> vector<1x128xf32>
    %10 = tpu.iota {dimensions = array<i32: 0>} : vector<16x128xi32>
    %11 = vector.broadcast %3 : vector<1x128xf32> to vector<16x128xf32>
    %12 = arith.cmpf oeq, %0, %11 : vector<16x128xf32>
    %c16_i32 = arith.constant 16 : i32
    %13 = vector.broadcast %c16_i32 : i32 to vector<16x128xi32>
    %14 = arith.select %12, %10, %13 : vector<16x128xi1>, vector<16x128xi32>
    %cst_4 = arith.constant dense<2147483647> : vector<128xi32>
    %15 = vector.multi_reduction <minsi>, %14, %cst_4 [0] : vector<16x128xi32> to vector<128xi32>
    %16 = vector.shape_cast %15 : vector<128xi32> to vector<1x128xi32>
    %17 = arith.cmpi eq, %16, %1 : vector<1x128xi32>
    %18 = arith.extui %17 : vector<1x128xi1> to vector<1x128xi32>
    %19 = arith.sitofp %18 : vector<1x128xi32> to vector<1x128xf32>
    %20 = tpu.iota {dimensions = array<i32: 1>} : vector<1x128xi32>
    %c128_i32 = arith.constant 128 : i32
    %21 = arith.muli %arg0, %c128_i32 : i32
    %22 = vector.broadcast %21 : i32 to vector<1x128xi32>
    %23 = arith.addi %22, %20 : vector<1x128xi32>
    %c256_i32 = arith.constant 256 : i32
    %24 = vector.broadcast %c256_i32 : i32 to vector<1x128xi32>
    %25 = arith.cmpi slt, %23, %24 : vector<1x128xi32>
    %cst_5 = arith.constant 1.000000e+00 : f32
    %26 = vector.broadcast %cst_5 : f32 to vector<1x128xf32>
    %27 = arith.select %25, %9, %26 : vector<1x128xi1>, vector<1x128xf32>
    %28 = arith.subf %27, %19 : vector<1x128xf32>
    %cst_6 = arith.constant 0.000000e+00 : f32
    %29 = vector.broadcast %cst_6 : f32 to vector<1x128xf32>
    %30 = arith.select %25, %28, %29 : vector<1x128xi1>, vector<1x128xf32>
    %cst_7 = arith.constant 1.000000e+01 : f32
    %31 = vector.broadcast %cst_7 : f32 to vector<1x128xf32>
    %32 = arith.mulf %27, %31 : vector<1x128xf32>
    %33 = math.ceil %32 : vector<1x128xf32>
    %34 = arith.fptosi %33 : vector<1x128xf32> to vector<1x128xi32>
    %c1_i32 = arith.constant 1 : i32
    %35 = vector.broadcast %c1_i32 : i32 to vector<1x128xi32>
    %36 = arith.subi %34, %35 : vector<1x128xi32>
    %c0_i32 = arith.constant 0 : i32
    %c9_i32 = arith.constant 9 : i32
    %37 = vector.broadcast %c0_i32 : i32 to vector<1x128xi32>
    %38 = arith.maxsi %37, %36 : vector<1x128xi32>
    %39 = vector.broadcast %c9_i32 : i32 to vector<1x128xi32>
    %40 = arith.minsi %39, %38 : vector<1x128xi32>
    %41 = tpu.iota {dimensions = array<i32: 0>} : vector<10x128xi32>
    %42 = vector.broadcast %40 : vector<1x128xi32> to vector<10x128xi32>
    %43 = arith.cmpi eq, %41, %42 : vector<10x128xi32>
    %cst_8 = arith.constant 0.000000e+00 : f32
    %44 = vector.shape_cast %30 : vector<1x128xf32> to vector<1x128xf32>
    %45 = vector.broadcast %44 : vector<1x128xf32> to vector<10x128xf32>
    %46 = vector.broadcast %cst_8 : f32 to vector<10x128xf32>
    %47 = arith.select %43, %45, %46 : vector<10x128xi1>, vector<10x128xf32>
    %cst_9 = arith.constant dense<0.000000e+00> : vector<10xf32>
    %48 = vector.multi_reduction <add>, %47, %cst_9 [1] : vector<10x128xf32> to vector<10xf32>
    %49 = vector.shape_cast %48 : vector<10xf32> to vector<10x1xf32>
    %c0_10 = arith.constant 0 : index
    %c0_11 = arith.constant 0 : index
    %c0_12 = arith.constant 0 : index
    %50 = vector.load %arg3[%c0_10, %c0_11, %c0_12] : memref<1x10x1xf32, #tpu.memory_space<vmem>>, vector<1x10x1xf32>
    %51 = vector.shape_cast %50 : vector<1x10x1xf32> to vector<10x1xf32>
    %52 = vector.shape_cast %49 : vector<10x1xf32> to vector<1x10x1xf32>
    tpu.vector_store %arg3[%c0_10, %c0_11, %c0_12], %52 {strides = array<i32>} : memref<1x10x1xf32, #tpu.memory_space<vmem>>, vector<1x10x1xf32>,
    return
  }
  func.func @transform_0(%arg0: i32) -> (i32, i32) {
    %c0_i32 = arith.constant 0 : i32
    %c0_i32_0 = arith.constant 0 : i32
    return %c0_i32, %arg0 : i32, i32
  }
  func.func @transform_1(%arg0: i32) -> (i32, i32) {
    %c0_i32 = arith.constant 0 : i32
    %c0_i32_0 = arith.constant 0 : i32
    return %c0_i32, %arg0 : i32, i32
  }
  func.func @transform_2(%arg0: i32) -> (i32, i32, i32) {
    %c0_i32 = arith.constant 0 : i32
    %c0_i32_0 = arith.constant 0 : i32
    %c0_i32_1 = arith.constant 0 : i32
    return %arg0, %c0_i32, %c0_i32_0 : i32, i32, i32
  }
}

</mosaic_0001>

<bundles_post_ra>
// kernel: tpu_custom_call.1
= control target key start
LH: loop header
LB: loop body
LE: loop exit
PB: predicated region body
PF: predicated region fallthrough
CT: control target
= control target key end

     0   :  { %7 = vsyncpa [#allocation3], 0  ;;  %s609_s0 = inlined_call_operand.hbm [shape: f32[16,256], index: 0, kind: input, shape index: {}]   ;;  %s610_s1 = inlined_call_operand.vmem [shape: s32[1,256], index: 1, kind: input, shape index: {}]   ;;  %s611_s2 = inlined_call_operand.vmem [shape: f32[2,10,1], index: 2, kind: output, shape index: {}]  }
   0x1   :  { %9 = vsyncpa [#allocation3 + $0x1], 0  ;;  %s485_s9 = smov 0   ;;  %s487_s10 = smov 0  }
   0x2   :  { %s489_s11 = smov 0   ;;  %s491_s12 = smov 0  }
   0x3 LB: > { %s504_s13 = sadd.s32 4294967295, %s463_s12   ;;  %s507_s14 = sadd.s32 1, %s463_s12   ;;  %s463_s12 = sphi %s491_s12, %s617_s12   ;;  %s459_s11 = sphi %s489_s11, %s616_s11   ;;  %s455_s10 = sphi %s487_s10, %s615_s10   ;;  %s451_s9 = sphi %s485_s9, %s614_s9  }
   0x4   : > { %s19_s15 = ssub.s32 %s463_s12, %s507_s14  ;;  %s22_s16 = sadd.s32 1, %s459_s11 }
   0x5   : > { %p20_p0 = scmp.eq.s32.totalorder %s19_s15, 0  ;;  %p29_p1 = scmp.ne.s32.totalorder %s459_s11, %s455_s10 }
   0x6   : > { %p30_p2 = scmp.eq.s32.totalorder %s463_s12, 0  ;;  %p35_p3 = scmp.ne.s32.totalorder %s455_s10, %s451_s9 }
   0x7   : > { %s517_s17 = scalar_select %p20_p0, %s459_s11, %s22_s16  }
   0x8   : > { %p31_p4 = por %p30_p2, %p29_p1  ;;  %p36_p5 = scmp.eq.s32.totalorder %s504_s13, 0 }
   0x9   : > { %p356_p6 = scmp.lt.s32.totalorder %s463_s12, 2  ;;  %s111_s19 = sand.u32 1, %s459_s11  }
   0xa   : > { %p521_p7 = por %p36_p5, %p35_p3  ;;  %s336_s20 = sshll.u32 %s111_s19, 4 }
   0xb   : > { %s337_s21 = sshll.u32 %s463_s12, 7  ;;  %s115_s25 = scalar_lea.vmem [#allocation2], %s336_s20 }
   0xc   : > { %s530_s24 = scalar_lea.hbm %s609_s0, %s337_s21  ;;  %s121_s26 = sshll.u32 %s115_s25, 4  ;;  %s532_s26 = int_to_ptr.vmem [resolvable:$true] %s121_s26 }
   0xd   : > { %p534_p8 = pnand %p356_p6, %p31_p4  ;;  %s538_s28 = scalar_lea.sflag [#allocation3], %s111_s19 }
   0xe   : > { %s399_s29 = scalar_lea.hbm %s530_s24, 256  ;;  %s404_s4 = scalar_lea.hbm %s609_s0, 512 }
   0xf   : > { %p400_p9 = scmp.ne.s32.totalorder %s530_s24, %s399_s29  ;;  %p401_p10 = pneg %p534_p8 }
  0x10   : > { %p405_p13 = scmp.lt.u32.totalorder %s530_s24, %s609_s0  ;;  %p406_p0 = scmp.lt.u32.totalorder %s404_s4, %s399_s29 }
  0x11   : > { %p402_p11 = pnand %p401_p10, %p400_p9  ;;  %p408_p2 = scmp.lt.u32.totalorder %s399_s29, %s530_s24 }
  0x12   : > { %p407_p1 = por %p406_p0, %p405_p13 }
  0x13   : > { %p403_p12 = pneg %p402_p11 }
  0x14   : > { %p409_p3 = por %p408_p2, %p407_p1 }
  0x16   : > { %p410_p4 = pnand %p409_p3, %p403_p12 }
  0x18   : > { %413 = shalt.err (!%p410_p4)
}
  0x19   : > { %s414_s7 = scalar_lea.vmem %s532_s26, 256  ;;  %s465_s8 = smov [#allocation2]  }
  0x1a   : > { %p415_p5 = scmp.ne.s32.totalorder %s532_s26, %s414_s7  ;;  %s419_s9 = sshll.u32 %s465_s8, 4  ;;  %s420_s9 = int_to_ptr.vmem [resolvable:$false] %s419_s9 }
  0x1b   : > { %s421_s15 = scalar_lea.vmem %s420_s9, 512  ;;  %p422_p11 = scmp.lt.s32.totalorder %s532_s26, %s420_s9 }
  0x1c   : > { %p417_p6 = pnand %p415_p5, %p401_p10  ;;  %p423_p13 = scmp.lt.s32.totalorder %s421_s15, %s414_s7 }
  0x1e   : > { %p418_p9 = pneg %p417_p6  ;;  %p424_p0 = por %p423_p13, %p422_p11 }
  0x20   : > { %p425_p1 = pnand %p424_p0, %p418_p9 }
  0x22   : > { %428 = shalt.err (!%p425_p1)
}
  0x23   : > { %s466_s16 = smov 256   ;;  %s467_s19 = smov 128  }
  0x24   : > { %s468_s20 = smov 8   ;;  %p338_p10 = scmp.ge.s32.totalorder %s463_s12, 1 }
  0x25   : > { %355 = dma.hbm_to_vmem [thread:$0]  (!%p534_p8), %s530_s24, 256, %s532_s26, %s538_s28, %s466_s16, %s467_s19, %s468_s20  }
  0x26   : > { %p135_p12 = scmp.lt.s32.totalorder %s463_s12, 3 }
  0x28   : > { %p136_p2 = pnand %p338_p10, %p135_p12 }
  0x29   : > { %s141_s21 = sand.u32 (!%p136_p2), 1, %s455_s10  }
  0x2a   : > { %139 = sbr.rel (%p136_p2) target bundleno = 270 (0x10e), region = 28  ;;  %s339_s22 = sshll.u32 (!%p136_p2), %s141_s21, 4 }
  0x2b   : > { %s142_s23 = scalar_lea.sflag (!%p136_p2), [#allocation3], %s141_s21  ;;  %s145_s25 = scalar_lea.vmem (!%p136_p2), [#allocation2], %s339_s22 }
  0x31   : > { %446 = dma.done.wait (%p521_p7), %s142_s23, 256  }
  0x32   : > { %448 = vsyncadd (%p521_p7), %s142_s23, 4294967040  ;;  %v177_v0 = vld [vmem:[%s145_s25] sm:$0xff]  ;;  %v178_v1 = vld [vmem:[%s145_s25 + $0x8] sm:$0xff]  ;;  %v201_v4 = vlaneseq  ;;  %p169_p7 = scmp.lt.s32.totalorder %s504_s13, 1  ;;  %s343_s12 = sshll.u32 %s504_s13, 7  ;;  %v469_v41 = vmov 0.0  }
  0x33   : > { %v180_v2 = vmax.f32 %v177_v0, %v178_v1  ;;  %v225_v34 = vstv %s343_s12  ;;  %vm249_vm12 = vcmask 1041408   ;;  %vm253_vm13 = vcmask 7168  }
  0x34   : > { %v573_v7 = vshrl.u32 %v201_v4, 7  ;;  %s619_s13 = smov (!%p169_p7, %s504_s13), 1  ;;  %v223_v33 = vand.u32 127, %v201_v4  ;;  %vm255_vm14 = vcmask 1024  }
  0x35   : > { %v181_v3 = vrot.slane %v180_v2, 4  ;;  %s171_s26 = scalar_lea.vmem %s610_s1, %s619_s13  ;;  %s347_s27 = sshll.u32 %s619_s13, 4 }
  0x36   : > { %v576_v10 = vadd.s32 8, %v573_v7  ;;  %v226_v35 = vadd.s32 %v225_v34, %v223_v33  ;;  %v179_v36 = vld [vmem:[%s171_s26] sm:$0x1]  ;;  %v243_v47 = vsub.s32 0, %v573_v7  ;;  %s176_s30 = scalar_lea.vmem %s611_s2, %s347_s27 }
  0x37   : > { %v182_v5 = vmax.f32 %v180_v2, %v181_v3 }
  0x38   : > { %vm227_vm6 = vcmp.lt.s32.totalorder %v226_v35, 256 }
  0x39   : > { %v183_v6 = vrot.slane %v182_v5, 2 }
  0x3b   : > { %v184_v8 = vmax.f32 %v182_v5, %v183_v6 }
  0x3d   : > { %v185_v9 = vrot.slane %v184_v8, 1 }
  0x3f   : > { %v186_v11 = vmax.f32 %v184_v8, %v185_v9 }
  0x41   : > { %v187_v12 = vsub.f32 %v177_v0, %v186_v11  ;;  %v188_v13 = vsub.f32 %v178_v1, %v186_v11  ;;  %vm204_vm0 = vcmp.eq.f32.partialorder %v177_v0, %v186_v11  ;;  %vm205_vm1 = vcmp.eq.f32.partialorder %v178_v1, %v186_v11 }
  0x42   : > { %v206_v14 = vsel %vm204_vm0, %v573_v7, 16  ;;  %v207_v15 = vsel %vm205_vm1, %v576_v10, 16 }
  0x43   : > { %v189_v16 = vmul.f32 1.442695, %v187_v12  ;;  %v191_v17 = vmul.f32 1.442695, %v188_v13  ;;  %vm208_vm2 = vcmp.lt.s32.totalorder %v206_v14, %v207_v15 }
  0x44   : > { %v209_v18 = vsel %vm208_vm2, %v206_v14, %v207_v15 }
  0x45   : > { %393 = vpow2.f32 %v189_v16  ;;  %v210_v19 = vrot.slane %v209_v18, 4 }
  0x46   : > { %395 = vpow2.f32 %v191_v17 }
  0x47   : > { %vm211_vm3 = vcmp.lt.s32.totalorder %v209_v18, %v210_v19 }
  0x48   : > { %v212_v23 = vsel %vm211_vm3, %v209_v18, %v210_v19 }
  0x49   : > { %v213_v26 = vrot.slane %v212_v23, 2 }
  0x4b   : > { %vm214_vm4 = vcmp.lt.s32.totalorder %v212_v23, %v213_v26 }
  0x4c   : > { %v215_v30 = vsel %vm214_vm4, %v212_v23, %v213_v26 }
  0x4d   : > { %v216_v32 = vrot.slane %v215_v30, 1 }
  0x4f   : > { %v394_v20 = vpop.eup %393  ;;  %vm217_vm5 = vcmp.lt.s32.totalorder %v215_v30, %v216_v32 }
  0x50   : > { %v396_v21 = vpop.eup %395  ;;  %v218_v37 = vsel %vm217_vm5, %v215_v30, %v216_v32 }
  0x51   : > { %v193_v22 = vadd.f32 %v396_v21, %v394_v20  ;;  %vm219_vm7 = vcmp.eq.s32.totalorder %v218_v37, %v179_v36 }
  0x52   : > { %v342_v42 = vsel %vm219_vm7, 1.0, %v469_v41 }
  0x53   : > { %v194_v24 = vrot.slane %v193_v22, 4 }
  0x55   : > { %v195_v25 = vadd.f32 %v194_v24, %v193_v22 }
  0x57   : > { %v196_v27 = vrot.slane %v195_v25, 2 }
  0x59   : > { %v197_v28 = vadd.f32 %v196_v27, %v195_v25 }
  0x5b   : > { %v198_v29 = vrot.slane %v197_v28, 1 }
  0x5d   : > { %v199_v31 = vadd.f32 %v198_v29, %v197_v28 }
  0x5f   : > { %397 = vrcp.f32 %v199_v31 }
  0x69   : > { %v398_v38 = vpop.eup %397 }
  0x6a   : > { %v228_v39 = vsel %vm227_vm6, %v398_v38, 1.0 }
  0x6b   : > { %v231_v40 = vmul.f32 10.0, %v228_v39  ;;  %v229_v44 = vsub.f32 %v228_v39, %v342_v42 }
  0x6d   : > { %v232_v43 = vceil.f32 %v231_v40  ;;  %v230_v48 = vsel %vm227_vm6, %v229_v44, 0.0 }
  0x6e   : > { %v244_v51 = vrot.slane %v230_v48, %v243_v47 }
  0x6f   : > { %v348_v45 = vtrunc.f32 %v232_v43 }
  0x71   : > { %v349_v46 = vcvt.f32.s32 %v348_v45 }
  0x73   : > { %v344_v49 = vadd.s32 4294967295, %v349_v46 }
  0x75   : > { %vm235_vm8 = vcmp.gt.s32.totalorder %v344_v49, 0 }
  0x76   : > { %v236_v50 = vsel %vm235_vm8, %v344_v49, 0 }
  0x77   : > { %vm237_vm9 = vcmp.lt.s32.totalorder %v236_v50, 9 }
  0x78   : > { %v238_v52 = vsel %vm237_vm9, %v236_v50, 9 }
  0x79   : > { %vm239_vm10 = vcmp.eq.s32.totalorder %v573_v7, %v238_v52  ;;  %vm240_vm11 = vcmp.eq.s32.totalorder %v576_v10, %v238_v52 }
  0x7a   : > { %v245_v53 = vsel %vm239_vm10, %v244_v51, 0.0  ;;  %v246_v54 = vsel %vm240_vm11, %v244_v51, 0.0 }
  0x7b   : > { %247 = vadd.xlane.f32.xlu0 %v245_v53  ;;  %v250_v55 = vsel %vm249_vm12, %v246_v54, 0.0 }
  0x7f   : > { %251 = vadd.xlane.f32.xlu0 %v250_v55 }
 0x108   : > { %v248_v56 = vpop.xlane.xlu0 %247 }
 0x109   : > { %254 = vst.msk [vmem:[%s176_s30] sm:$0xff] %vm253_vm13, %v248_v56 }
 0x10c   : > { %v252_v57 = vpop.xlane.xlu0 %251 }
 0x10d   : > { %256 = vst.msk [vmem:[%s176_s30 + $0x8] sm:$0x3] %vm255_vm14, %v252_v57 }
 0x10e PF: > { %p12_p8 = scmp.ge.s32.totalorder %s507_s14, 4   ;;  %s614_s9 = smov %s455_s10 }
 0x10f   : > { %s615_s10 = smov %s459_s11  ;;  %s616_s11 = smov %s517_s17 }
 0x110   : > { %s617_s12 = smov %s507_s14  ;;  %14 = sbr.rel (!%p12_p8) target bundleno = 3 (0x3), region = 71 }
 0x117   :  { %278 = vsyncpa [#allocation3], 1 }
 0x118   :  { %280 = vsyncpa [#allocation3 + $0x1], 1 }

</bundles_post_ra>
